<compile_context>
chip_gen: v7x
topology: tpu7x:2x2x1
jax: 0.10.0
libtpu: 0.0.40
codegen_flags: <defaults>
</compile_context>

<pallas_src>
import functools

import jax
import jax.numpy as jnp
from jax import lax
from jax.experimental import pallas as pl
from jax.experimental.pallas import tpu as pltpu

LEAKY_SLOPE = 0.2
BN_EPS = 1e-5
VMEM_LIMIT = 32 * 1024 * 1024   # safe scoped limit on v5e / v6e / v7x


def _n_tile(n):
    return 128 if n % 128 == 0 else n


# ---------------------------------------------------------------------------
# Kernel 1: negative squared pairwise distances (for the kNN graph), row-tiled.
#   neg_dist[b, i, j] = -||x_i - x_j||^2 = 2 <x_i, x_j> - ||x_i||^2 - ||x_j||^2
# Row/col norms are computed in-kernel; output is bf16 to halve the N^2 buffer.
# ---------------------------------------------------------------------------
def _pdist_kernel(xr_ref, xf_ref, o_ref):
    xr = xr_ref[0]                                                  # (TM, C) row tile
    xf = xf_ref[0]                                                  # (N,  C) all points
    inner = lax.dot_general(xr, xf, (((1,), (1,)), ((), ())),
                            preferred_element_type=jnp.float32)     # (TM, N)
    sq_r = jnp.sum(xr * xr, axis=-1, keepdims=True)                 # (TM, 1)
    ones = jnp.ones((1, xf.shape[-1]), jnp.float32)
    sq_c = lax.dot_general(ones, xf * xf, (((1,), (1,)), ((), ())),
                           preferred_element_type=jnp.float32)      # (1, N)
    o_ref[0] = (2.0 * inner - sq_r - sq_c).astype(o_ref.dtype)


def neg_pairwise_dist(feat_bnc):
    B, N, C = feat_bnc.shape
    TM = _n_tile(N)
    return pl.pallas_call(
        _pdist_kernel,
        out_shape=jax.ShapeDtypeStruct((B, N, N), jnp.bfloat16),
        grid=(B, N // TM),
        in_specs=[pl.BlockSpec((1, TM, C), lambda b, i: (b, i, 0)),
                  pl.BlockSpec((1, N, C), lambda b, i: (b, 0, 0))],
        out_specs=pl.BlockSpec((1, TM, N), lambda b, i: (b, i, 0)),
        compiler_params=pltpu.CompilerParams(
            dimension_semantics=("parallel", "parallel"),
            vmem_limit_bytes=VMEM_LIMIT),
    )(feat_bnc, feat_bnc)


def knn_gather(feat_bnc, k):
    """Neighbour features (B, K, N, C) in bf16 for the k nearest neighbours."""
    neg_dist = neg_pairwise_dist(feat_bnc)                          # (B, N, N) bf16
    # TODO(synk): top-k selection + data-dependent gather stay in XLA (no clean
    # Pallas TPU top-k); longer term the k-selection could run inside the pdist
    # kernel so (B, N, N) never reaches HBM.
    idx = lax.top_k(neg_dist, k)[1]                                 # (B, N, K) int32
    idx_t = jnp.transpose(idx, (0, 2, 1))                           # (B, K, N) tiny
    feat_bf = feat_bnc.astype(jnp.bfloat16)
    xn = jax.vmap(lambda xb, ib: xb[ib])(feat_bf, idx_t)            # (B, K, N, C) k-major
    return xn


# ---------------------------------------------------------------------------
# Kernel 2: fused edge-convolution block, tiled over (batch, N-tiles).
# concat(x_j - x_i, x_i) @ [Wd; Wc]  ==  x_j @ Wd + x_i @ (Wc - Wd), so the kernel
# reads the gathered neighbours directly (no diff tensor), adds the centre term
# with an implicit broadcast, applies folded-BN scale/bias + LeakyReLU, optional
# second 1x1 conv layer, and the max over k.  MXU ops run on bf16 with f32 acc.
# ---------------------------------------------------------------------------
def _edgeconv_kernel(nlayers, xc_ref, xn_ref, *args):
    out_ref = args[-1]
    p = args[:-1]
    xc = xc_ref[0]                                                  # (TN, C)    f32
    xn = xn_ref[0]                                                  # (K, TN, C) bf16
    k, tn, c = xn.shape

    wd, wcd, s1, b1 = p[0][...], p[1][...], p[2][...], p[3][...]
    h_dim = wd.shape[-1]
    h = jnp.dot(xn.reshape(k * tn, c), wd,
                preferred_element_type=jnp.float32) * s1            # (K*TN, H)
    hc = jnp.dot(xc.astype(jnp.bfloat16), wcd,
                 preferred_element_type=jnp.float32) * s1 + b1      # (TN, H)
    h = h.reshape(k, tn, h_dim) + hc[None, :, :]                    # implicit bcast
    h = jnp.where(h > 0, h, LEAKY_SLOPE * h)

    pi = 4
    for _ in range(nlayers - 1):
        w, s, b = p[pi][...], p[pi + 1][...], p[pi + 2][...]
        pi += 3
        h2 = jnp.dot(h.reshape(k * tn, h_dim).astype(jnp.bfloat16), w,
                     preferred_element_type=jnp.float32)
        h2 = h2 * s + b
        h2 = jnp.where(h2 > 0, h2, LEAKY_SLOPE * h2)
        h_dim = w.shape[-1]
        h = h2.reshape(k, tn, h_dim)

    out_ref[0] = jnp.max(h, axis=0).astype(out_ref.dtype)           # (TN, H)


def edgeconv_block(xc, xn, layer_params):
    """xc: (B,N,C) f32 centres; xn: (B,K,N,C) bf16 neighbours -> (B,N,H) f32."""
    B, N, C = xc.shape
    K = xn.shape[1]
    TN = _n_tile(N)
    nlayers = len(layer_params)
    H = layer_params[-1][-1].shape[-1]

    wd, wc, s1, b1 = layer_params[0]
    flat = [wd.astype(jnp.bfloat16), (wc - wd).astype(jnp.bfloat16),
            s1.astype(jnp.float32), b1.astype(jnp.float32)]
    for (w, s, b) in layer_params[1:]:
        flat += [w.astype(jnp.bfloat16), s.astype(jnp.float32), b.astype(jnp.float32)]

    in_specs = [pl.BlockSpec((1, TN, C), lambda b, n: (b, n, 0)),
                pl.BlockSpec((1, K, TN, C), lambda b, n: (b, 0, n, 0))]
    # all params are 2-D and replicated over the grid
    in_specs += [pl.BlockSpec(a.shape, lambda b, n: (0, 0)) for a in flat]

    return pl.pallas_call(
        functools.partial(_edgeconv_kernel, nlayers),
        out_shape=jax.ShapeDtypeStruct((B, N, H), jnp.float32),
        grid=(B, N // TN),
        in_specs=in_specs,
        out_specs=pl.BlockSpec((1, TN, H), lambda b, n: (b, n, 0)),
        compiler_params=pltpu.CompilerParams(
            dimension_semantics=("parallel", "parallel"),
            vmem_limit_bytes=VMEM_LIMIT),
    )(xc, xn, *flat)


# ---------------------------------------------------------------------------
# Deterministic parameter init (Conv2d 1x1 bias-free + folded inference BatchNorm)
# ---------------------------------------------------------------------------
def _fold_bn(key, h):
    k1, k2, k3, k4 = jax.random.split(key, 4)
    gamma = 1.0 + 0.1 * jax.random.normal(k1, (h,), jnp.float32)
    beta = 0.1 * jax.random.normal(k2, (h,), jnp.float32)
    rmean = 0.1 * jax.random.normal(k3, (h,), jnp.float32)
    rvar = 1.0 + 0.1 * jnp.abs(jax.random.normal(k4, (h,), jnp.float32))
    scale = gamma / jnp.sqrt(rvar + BN_EPS)
    bias = beta - rmean * scale
    return scale.reshape(1, h), bias.reshape(1, h)


def _init_edge_layer(key, c_in, c_out):
    """First layer of a block: 1x1 conv over concat(x_j - x_i, x_i) -> 2*c_in inputs."""
    kw, kb = jax.random.split(key)
    w = 0.1 * jax.random.normal(kw, (2 * c_in, c_out), jnp.float32)
    scale, bias = _fold_bn(kb, c_out)
    return (w[:c_in], w[c_in:], scale, bias)      # (Wd, Wc, scale, bias)


def _init_plain_layer(key, c_in, c_out):
    kw, kb = jax.random.split(key)
    w = 0.1 * jax.random.normal(kw, (c_in, c_out), jnp.float32)
    scale, bias = _fold_bn(kb, c_out)
    return (w, scale, bias)


def init_encoder_params(key):
    ks = jax.random.split(key, 6)
    return {
        # conv0: MultiEdgeConvolution(k, in_features=6,  mlp=(64, 64))
        "conv0": [_init_edge_layer(ks[0], 6, 64), _init_plain_layer(ks[1], 64, 64)],
        # conv1: MultiEdgeConvolution(k, in_features=64, mlp=(64, 64))
        "conv1": [_init_edge_layer(ks[2], 64, 64), _init_plain_layer(ks[3], 64, 64)],
        # conv2 / conv3: EdgeConvolution(k, 64, 64)
        "conv2": [_init_edge_layer(ks[4], 64, 64)],
        "conv3": [_init_edge_layer(ks[5], 64, 64)],
    }


# ---------------------------------------------------------------------------
# Encoder forward
# ---------------------------------------------------------------------------
def encoder_forward(x_bcn, params, k):
    """x_bcn: (B, 6, N) PyTorch layout -> features (B, 256, N)."""
    x_bnc = jnp.transpose(x_bcn, (0, 2, 1)).astype(jnp.float32)

    def block(feat, lp):
        xn = knn_gather(feat, k)
        return edgeconv_block(feat, xn, lp)

    x1 = block(x_bnc, params["conv0"])     # (B, N, 64)
    x2 = block(x1, params["conv1"])
    x3 = block(x2, params["conv2"])
    x4 = block(x3, params["conv3"])
    feats = jnp.concatenate([x1, x2, x3, x4], axis=-1)   # (B, N, 256)  (small)
    return jnp.transpose(feats, (0, 2, 1))               # (B, 256, N)


# Pure-JAX reference of the edge-conv block (sanity check of kernel math).
def edgeconv_ref(xc, xn, layer_params):
    xn = xn.astype(jnp.float32)
    diff = xn - xc[:, None, :, :]                                  # (B, K, N, C)
    wd, wc, s1, b1 = layer_params[0]
    h = (jnp.einsum('bknc,ch->bknh', diff, wd, precision=lax.Precision.HIGHEST)
         + jnp.einsum('bnc,ch->bnh', xc, wc, precision=lax.Precision.HIGHEST)[:, None])
    h = h * s1 + b1
    h = jnp.where(h > 0, h, LEAKY_SLOPE * h)
    for (w, s, b) in layer_params[1:]:
        h = jnp.einsum('bknh,hg->bkng', h, w, precision=lax.Precision.HIGHEST)
        h = h * s + b
        h = jnp.where(h > 0, h, LEAKY_SLOPE * h)
    return jnp.max(h, axis=1)                                      # (B, N, H)


if __name__ == "__main__":
    B, C_IN, N, K = 2, 6, 128, 20                 # small shapes; Encoder default k=20
    key = jax.random.PRNGKey(0)
    kx, kp = jax.random.split(key)
    x = jax.random.normal(kx, (B, C_IN, N), jnp.float32)   # PyTorch layout (B, C, N)
    params = init_encoder_params(kp)

    # --- sanity check the two Pallas kernels against pure JAX (bf16 tolerances) ---
    x_bnc = jnp.transpose(x, (0, 2, 1))
    nd = neg_pairwise_dist(x_bnc).astype(jnp.float32)
    sq = jnp.sum(x_bnc * x_bnc, axis=-1)
    nd_ref = (2.0 * jnp.einsum('bic,bjc->bij', x_bnc, x_bnc,
                               precision=lax.Precision.HIGHEST)
              - sq[:, :, None] - sq[:, None, :])
    assert jnp.allclose(nd, nd_ref, atol=5e-1, rtol=2e-2), \
        float(jnp.max(jnp.abs(nd - nd_ref)))

    xn0 = knn_gather(x_bnc, K)
    y_pallas = edgeconv_block(x_bnc, xn0, params["conv0"])
    y_ref = edgeconv_ref(x_bnc, xn0, params["conv0"])
    assert jnp.allclose(y_pallas, y_ref, atol=5e-2, rtol=5e-2), \
        float(jnp.max(jnp.abs(y_pallas - y_ref)))

    # --- full encoder forward ---
    fwd = jax.jit(functools.partial(encoder_forward, k=K))
    out = fwd(x, params)
    jax.block_until_ready(out)
    assert out.shape == (B, 4 * 64, N), out.shape
    assert bool(jnp.all(jnp.isfinite(out)))
    print("KERNEL_OK")
</pallas_src>

<mosaic_0001>
module attributes {stable_mosaic.version = 11 : i64} {
  func.func @_pdist_kernel(%arg0: i32, %arg1: i32, %arg2: memref<1x128x6xf32, #tpu.memory_space<vmem>>, %arg3: memref<1x128x6xf32, #tpu.memory_space<vmem>>, %arg4: memref<1x128x128xbf16, #tpu.memory_space<vmem>>) attributes {dimension_semantics = [#tpu.dimension_semantics<parallel>, #tpu.dimension_semantics<parallel>], iteration_bounds = array<i64: 2, 1>, scalar_prefetch = 0 : i64, scratch_operands = 0 : i64, tpu.core_type = #tpu.core_type<tc>, window_params = [{transform_indices = @transform_0, window_bounds = array<i64: 1, 128, 6>}, {transform_indices = @transform_1, window_bounds = array<i64: 1, 128, 6>}, {transform_indices = @transform_2, window_bounds = array<i64: 1, 128, 128>}]} {
    %c0 = arith.constant 0 : index
    %c0_0 = arith.constant 0 : index
    %c0_1 = arith.constant 0 : index
    %0 = vector.load %arg2[%c0, %c0_0, %c0_1] : memref<1x128x6xf32, #tpu.memory_space<vmem>>, vector<1x128x6xf32>
    %1 = vector.shape_cast %0 : vector<1x128x6xf32> to vector<128x6xf32>
    %c0_2 = arith.constant 0 : index
    %c0_3 = arith.constant 0 : index
    %c0_4 = arith.constant 0 : index
    %2 = vector.load %arg3[%c0_2, %c0_3, %c0_4] : memref<1x128x6xf32, #tpu.memory_space<vmem>>, vector<1x128x6xf32>
    %3 = vector.shape_cast %2 : vector<1x128x6xf32> to vector<128x6xf32>
    %cst = arith.constant dense<0.000000e+00> : vector<128x128xf32>
    %4 = tpu.matmul %1, %3, %cst {dimension_numbers = #tpu.dot_dimension_numbers<[1], [1], [0], [0], [0, 0, 1, 0], [], []>} : vector<128x6xf32>, vector<128x6xf32>, vector<128x128xf32> -> vector<128x128xf32>
    %5 = arith.mulf %1, %1 : vector<128x6xf32>
    %cst_5 = arith.constant dense<0.000000e+00> : vector<128xf32>
    %6 = vector.multi_reduction <add>, %5, %cst_5 [1] : vector<128x6xf32> to vector<128xf32>
    %7 = vector.shape_cast %6 : vector<128xf32> to vector<128x1xf32>
    %cst_6 = arith.constant 1.000000e+00 : f32
    %8 = vector.broadcast %cst_6 : f32 to vector<1x6xf32>
    %9 = arith.mulf %3, %3 : vector<128x6xf32>
    %cst_7 = arith.constant dense<0.000000e+00> : vector<1x128xf32>
    %10 = tpu.matmul %8, %9, %cst_7 {dimension_numbers = #tpu.dot_dimension_numbers<[1], [1], [0], [0], [0, 0, 1, 0], [], []>} : vector<1x6xf32>, vector<128x6xf32>, vector<1x128xf32> -> vector<1x128xf32>
    %cst_8 = arith.constant 2.000000e+00 : f32
    %11 = vector.broadcast %cst_8 : f32 to vector<128x128xf32>
    %12 = arith.mulf %11, %4 : vector<128x128xf32>
    %13 = vector.broadcast %7 : vector<128x1xf32> to vector<128x128xf32>
    %14 = arith.subf %12, %13 : vector<128x128xf32>
    %15 = vector.broadcast %10 : vector<1x128xf32> to vector<128x128xf32>
    %16 = arith.subf %14, %15 : vector<128x128xf32>
    %17 = arith.truncf %16 : vector<128x128xf32> to vector<128x128xbf16>
    %c0_9 = arith.constant 0 : index
    %c0_10 = arith.constant 0 : index
    %c0_11 = arith.constant 0 : index
    %18 = vector.load %arg4[%c0_9, %c0_10, %c0_11] : memref<1x128x128xbf16, #tpu.memory_space<vmem>>, vector<1x128x128xbf16>
    %19 = vector.shape_cast %18 : vector<1x128x128xbf16> to vector<128x128xbf16>
    %20 = vector.shape_cast %17 : vector<128x128xbf16> to vector<1x128x128xbf16>
    tpu.vector_store %arg4[%c0_9, %c0_10, %c0_11], %20 {strides = array<i32>} : memref<1x128x128xbf16, #tpu.memory_space<vmem>>, vector<1x128x128xbf16>,
    return
  }
  func.func @transform_0(%arg0: i32, %arg1: i32) -> (i32, i32, i32) {
    %c0_i32 = arith.constant 0 : i32
    %c0_i32_0 = arith.constant 0 : i32
    return %arg0, %arg1, %c0_i32 : i32, i32, i32
  }
  func.func @transform_1(%arg0: i32, %arg1: i32) -> (i32, i32, i32) {
    %c0_i32 = arith.constant 0 : i32
    %c0_i32_0 = arith.constant 0 : i32
    %c0_i32_1 = arith.constant 0 : i32
    return %arg0, %c0_i32, %c0_i32_0 : i32, i32, i32
  }
  func.func @transform_2(%arg0: i32, %arg1: i32) -> (i32, i32, i32) {
    %c0_i32 = arith.constant 0 : i32
    %c0_i32_0 = arith.constant 0 : i32
    return %arg0, %arg1, %c0_i32 : i32, i32, i32
  }
}

</mosaic_0001>

<bundles_post_ra>
// kernel: tpu_custom_call.1
= control target key start
LH: loop header
LB: loop body
LE: loop exit
PB: predicated region body
PF: predicated region fallthrough
CT: control target
= control target key end

     0   :  { %7 = vsyncpa [#allocation3], 0  ;;  %s1783_s0 = inlined_call_operand.vmem [shape: f32[2,128,6], index: 0, kind: input, shape index: {}]   ;;  %s1784_s1 = inlined_call_operand.vmem [shape: f32[2,128,6], index: 1, kind: input, shape index: {}]   ;;  %s1785_s2 = inlined_call_operand.hbm [shape: bf16[2,128,128], index: 2, kind: output, shape index: {}]  }
   0x1   :  { %9 = vsyncpa [#allocation3 + $0x1], 0  ;;  %s1436_s9 = smov 0   ;;  %s1438_s10 = smov 0  }
   0x2   :  { %s1440_s11 = smov 0   ;;  %s1442_s12 = smov 0  }
   0x3   :  { %s1444_s13 = smov 0   ;;  %s1446_s14 = smov 0  }
   0x4 LB: > { %s907_s15 = sadd.s32 4294967295, %s1412_s14   ;;  %s908_s16 = sadd.s32 4294967294, %s1412_s14   ;;  %s1412_s14 = sphi %s1446_s14, %s15_s14   ;;  %s1408_s13 = sphi %s1444_s13, %s1794_s13   ;;  %s1404_s12 = sphi %s1442_s12, %s1793_s12   ;;  %s1400_s11 = sphi %s1440_s11, %s1792_s11   ;;  %s1396_s10 = sphi %s1438_s10, %s1791_s10   ;;  %s1392_s9 = sphi %s1436_s9, %s1790_s9  }
   0x5   : > { %s27_s17 = sadd.s32 1, %s1408_s13  ;;  %s90_s18 = sadd.s32 1, %s1400_s11 }
   0x6   : > { %p29_p0 = scmp.ge.s32.totalorder %s27_s17, 2  ;;  %p100_p1 = scmp.ne.s32.totalorder %s1400_s11, %s1396_s10 }
   0x7   : > { %p101_p2 = scmp.eq.s32.totalorder %s907_s15, 1  ;;  %p106_p3 = scmp.ne.s32.totalorder %s1396_s10, %s1392_s9 }
   0x8   : > { %s1796_s17 = smov (%p29_p0, %s27_s17), 0  ;;  %p107_p5 = scmp.eq.s32.totalorder %s908_s16, 1 }
   0x9   : > { %p1476_p4 = por %p101_p2, %p100_p1  ;;  %s85_s20 = ssub.s32 %s1408_s13, %s1796_s17 }
   0xa   : > { %p911_p6 = scmp.ge.s32.totalorder %s1412_s14, 1  ;;  %p88_p7 = scmp.eq.s32.totalorder %s85_s20, 0 }
   0xb   : > { %p1483_p8 = por %p107_p5, %p106_p3  ;;  %p146_p9 = scmp.lt.s32.totalorder %s1412_s14, 3 }
   0xc   : > { %s1489_s22 = scalar_select %p88_p7, %s1400_s11, %s90_s18  }
   0xd   : > { %p147_p10 = pnand %p911_p6, %p146_p9 }
   0xe   : > { %p178_p11 = scmp.lt.s32.totalorder (!%p147_p10), %s1404_s12, 1  ;;  %v1414_v0 = vmov (!%p147_p10), 0.0|0.0   ;;  %vm1415_vm0 = vmmov (!%p147_p10), 0   ;;  %v1416_v1 = vmov (!%p147_p10), 0.0   ;;  %vm225_vm1 = vcmask (!%p147_p10), 48128   ;;  %s174_s3 = sand.u32 (!%p147_p10), 1, %s1396_s10  }
   0xf   : > { %150 = sbr.rel (%p147_p10) target bundleno = 357 (0x165), region = 28  ;;  %1241 = vmatprep.subr.bf16.mxu1 (!%p147_p10), %v1414_v0  ;;  %1190 = vmatprep.mubr.msk.f32.mxu1 (!%p147_p10), %vm1415_vm0, %v1416_v1  ;;  %vm1501_vm2 = vmpackc.low (!%p147_p10), %vm225_vm1, %vm225_vm1  ;;  %s912_s4 = sshll.u32 (!%p147_p10), %s174_s3, 6 }
  0x10   : > { %s1703_s5 = scalar_lea.vmem (!%p147_p10), [#allocation2], %s912_s4  ;;  %s1005_s6 = sshll.u32 (!%p147_p10), %s1404_s12, 10 }
  0x11   : > { %s816_s7 = sshll.u32 (!%p147_p10), %s1703_s5, 4  ;;  %s1730_s16 = scalar_lea.hbm (!%p147_p10), %s1785_s2, %s1005_s6  ;;  %s1732_s7 = int_to_ptr.vmem [resolvable:$true] %s816_s7 }
  0x12   : > { %s1334_s18 = scalar_lea.vmem (!%p147_p10), %s1732_s7, 1024  ;;  %s1418_s20 = smov (!%p147_p10), [#allocation2]  }
  0x13   : > { %p1335_p12 = scmp.ne.s32.totalorder (!%p147_p10), %s1732_s7, %s1334_s18 }
  0x15   : > { %p1336_p13 = pnand (!%p147_p10), %p1335_p12, %p1476_p4 }
  0x16   : > { %s179_s23 = scalar_select %p178_p11, %s1404_s12, 1 }
  0x17   : > { %s1737_s12 = scalar_lea.sflag [#allocation3], %s174_s3  ;;  %p1337_p0 = pneg %p1336_p13 }
  0x18   : > { %s987_s24 = sshll.u32 %s179_s23, 7  ;;  %s1338_s23 = sshll.u32 %s1418_s20, 4  ;;  %s1339_s23 = int_to_ptr.vmem [resolvable:$false] %s1338_s23 }
  0x19   : > { %s1497_s27 = scalar_lea.vmem %s1784_s1, %s987_s24  ;;  %s1512_s30 = scalar_lea.vmem %s1783_s0, %s987_s24 }
  0x1a   : > { %v209_v3 = vld [vmem:[%s1497_s27] sm:$0xff]  ;;  %v210_v4 = vld [vmem:[%s1497_s27 + $0x8] sm:$0xff]  ;;  %v211_v5 = vld [vmem:[%s1497_s27 + $0x10] sm:$0xff]  ;;  %s1340_s24 = scalar_lea.vmem %s1339_s23, 2048  ;;  %p1341_p1 = scmp.lt.s32.totalorder %s1732_s7, %s1339_s23 }
  0x1b   : > { %v1193_v6 = vpack.c.bf16 %v210_v4, %v209_v3  ;;  %v531_v7 = vmul.f32 %v209_v3, %v209_v3  ;;  %v532_v8 = vmul.f32 %v210_v4, %v210_v4  ;;  %v212_v9 = vld [vmem:[%s1497_s27 + $0x18] sm:$0xff]  ;;  %v533_v12 = vmul.f32 %v211_v5, %v211_v5  ;;  %v213_v14 = vld [vmem:[%s1497_s27 + $0x20] sm:$0xff]  ;;  %v214_v15 = vld [vmem:[%s1497_s27 + $0x28] sm:$0xff]  ;;  %p1342_p2 = scmp.lt.s32.totalorder %s1340_s24, %s1334_s18 }
  0x1c   : > { %v1199_v10 = vpack.c.bf16 %v212_v9, %v211_v5  ;;  %v534_v13 = vmul.f32 %v212_v9, %v212_v9  ;;  %v193_v16 = vld [vmem:[%s1512_s30] sm:$0xff]  ;;  %v1205_v17 = vpack.c.bf16 %v214_v15, %v213_v14  ;;  %v1528_v19 = vld [vmem:[%s1512_s30 + $0x8] sm:$0xff]  ;;  %v1531_v20 = vld [vmem:[%s1512_s30 + $0x10] sm:$0xff]  ;;  %v535_v32 = vmul.f32 %v213_v14, %v213_v14 }
  0x1d   : > { %1195 = vmatprep.subr.msk.bf16.mxu0 %vm1501_vm2, %v1193_v6  ;;  %v1242_v11 = vpack.c.bf16 %v532_v8, %v531_v7  ;;  %1134 = vmatprep.mubr.msk.f32.mxu0 %vm225_vm1, %v193_v16  ;;  %v467_v18 = vmul.f32 %v193_v16, %v193_v16  ;;  %v1534_v21 = vld [vmem:[%s1512_s30 + $0x18] sm:$0xff]  ;;  %v469_v23 = vmul.f32 %v1531_v20, %v1531_v20  ;;  %v1544_v27 = vld [vmem:[%s1512_s30 + $0x20] sm:$0xff]  ;;  %v1550_v29 = vld [vmem:[%s1512_s30 + $0x28] sm:$0xff]  ;;  %p1343_p3 = por %p1342_p2, %p1341_p1 }
  0x1e   : > { %1198 = vmatpush3.bf16.xpose.msk.msra.mxu0 %vm1501_vm2, %v1193_v6  ;;  %v1246_v22 = vpack.c.bf16 %v534_v13, %v533_v12  ;;  %v468_v24 = vmul.f32 %v1528_v19, %v1528_v19  ;;  %v470_v25 = vmul.f32 %v1534_v21, %v1534_v21  ;;  %v471_v31 = vmul.f32 %v1544_v27, %v1544_v27  ;;  %v215_v36 = vld [vmem:[%s1497_s27 + $0x30] sm:$0xff]  ;;  %v216_v37 = vld [vmem:[%s1497_s27 + $0x38] sm:$0xff]  ;;  %v1578_v46 = vld [vmem:[%s1512_s30 + $0x40] sm:$0xff] }
  0x1f   : > { %1244 = vmatpush3.bf16.xpose.msk.msra.mxu1 %vm1501_vm2, %v1242_v11  ;;  %1201 = vmatprep.subr.msk.bf16.mxu0 %vm1501_vm2, %v1199_v10  ;;  %v483_v26 = vsel %vm225_vm1, %v467_v18, 0.0  ;;  %v489_v28 = vsel %vm225_vm1, %v469_v23, 0.0  ;;  %v536_v33 = vmul.f32 %v214_v15, %v214_v15  ;;  %v472_v35 = vmul.f32 %v1550_v29, %v1550_v29  ;;  %v1566_v38 = vld [vmem:[%s1512_s30 + $0x30] sm:$0xff]  ;;  %v1569_v39 = vld [vmem:[%s1512_s30 + $0x38] sm:$0xff]  ;;  %v1583_v47 = vld [vmem:[%s1512_s30 + $0x48] sm:$0xff]  ;;  %p1344_p5 = pnand %p1343_p3, %p1337_p0 }
  0x20   : > { %1245 = vmatprep.subr.bf16.mxu1 %v1414_v0  ;;  %484 = vadd.xlane.f32.xlu0 %v483_v26  ;;  %v486_v30 = vsel %vm225_vm1, %v468_v24, 0.0  ;;  %v492_v34 = vsel %vm225_vm1, %v470_v25, 0.0  ;;  %v495_v40 = vsel %vm225_vm1, %v471_v31, 0.0  ;;  %v473_v41 = vmul.f32 %v1566_v38, %v1566_v38  ;;  %v217_v54 = vld [vmem:[%s1497_s27 + $0x40] sm:$0xff]  ;;  %v218_v55 = vld [vmem:[%s1497_s27 + $0x48] sm:$0xff]  ;;  %v1599_v56 = vld [vmem:[%s1512_s30 + $0x50] sm:$0xff] }
  0x21   : > { %490 = vadd.xlane.f32.xlu1 %v489_v28  ;;  %v1250_v42 = vpack.c.bf16 %v536_v33, %v535_v32  ;;  %v1211_v43 = vpack.c.bf16 %v216_v37, %v215_v36  ;;  %v498_v44 = vsel %vm225_vm1, %v472_v35, 0.0  ;;  %v474_v45 = vmul.f32 %v1569_v39, %v1569_v39  ;;  %v1602_v57 = vld [vmem:[%s1512_s30 + $0x58] sm:$0xff]  ;;  %v1611_v1 = vld [vmem:[%s1512_s30 + $0x60] sm:$0xff]  ;;  %v1616_v3 = vld [vmem:[%s1512_s30 + $0x68] sm:$0xff] }
  0x22   : > { %v501_v48 = vsel %vm225_vm1, %v473_v41, 0.0  ;;  %v475_v49 = vmul.f32 %v1578_v46, %v1578_v46  ;;  %v537_v50 = vmul.f32 %v215_v36, %v215_v36  ;;  %v538_v51 = vmul.f32 %v216_v37, %v216_v37  ;;  %v220_v11 = vld [vmem:[%s1497_s27 + $0x58] sm:$0xff]  ;;  %v207_v12 = vld [vmem:[%s1512_s30 + $0x70] sm:$0xff]  ;;  %v221_v28 = vld [vmem:[%s1497_s27 + $0x60] sm:$0xff] }
  0x23   : > { %v504_v52 = vsel %vm225_vm1, %v474_v45, 0.0  ;;  %v476_v53 = vmul.f32 %v1583_v47, %v1583_v47  ;;  %v477_v59 = vmul.f32 %v1599_v56, %v1599_v56  ;;  %v1217_v61 = vpack.c.bf16 %v218_v55, %v217_v54  ;;  %v208_v13 = vld [vmem:[%s1512_s30 + $0x78] sm:$0xff]  ;;  %v223_v35 = vld [vmem:[%s1497_s27 + $0x70] sm:$0xff] }
  0x24   : > { %487 = vadd.xlane.f32.xlu0 %v486_v30  ;;  %v507_v58 = vsel %vm225_vm1, %v475_v49, 0.0  ;;  %v1254_v60 = vpack.c.bf16 %v538_v51, %v537_v50  ;;  %v478_v63 = vmul.f32 %v1602_v57, %v1602_v57  ;;  %v479_v5 = vmul.f32 %v1611_v1, %v1611_v1  ;;  %v222_v30 = vld [vmem:[%s1497_s27 + $0x68] sm:$0xff]  ;;  %v224_v36 = vld [vmem:[%s1497_s27 + $0x78] sm:$0xff] }
  0x25   : > { %493 = vadd.xlane.f32.xlu1 %v492_v34  ;;  %v510_v62 = vsel %vm225_vm1, %v476_v53, 0.0  ;;  %v513_v4 = vsel %vm225_vm1, %v477_v59, 0.0  ;;  %v539_v6 = vmul.f32 %v217_v54, %v217_v54  ;;  %v540_v7 = vmul.f32 %v218_v55, %v218_v55 }
  0x26   : > { %1204 = vmatpush3.bf16.xpose.msk.msra.mxu0 %vm1501_vm2, %v1199_v10  ;;  %v516_v8 = vsel %vm225_vm1, %v478_v63, 0.0  ;;  %v480_v9 = vmul.f32 %v1616_v3, %v1616_v3  ;;  %v219_v10 = vld [vmem:[%s1497_s27 + $0x50] sm:$0xff]  ;;  %v519_v14 = vsel %vm225_vm1, %v479_v5, 0.0  ;;  %v481_v15 = vmul.f32 %v207_v12, %v207_v12 }
  0x27   : > { %1248 = vmatpush3.bf16.xpose.msk.msra.mxu1 %vm1501_vm2, %v1246_v22  ;;  %1207 = vmatprep.subr.msk.bf16.mxu0 %vm1501_vm2, %v1205_v17  ;;  %v1258_v16 = vpack.c.bf16 %v540_v7, %v539_v6  ;;  %v482_v22 = vmul.f32 %v208_v13, %v208_v13  ;;  %v541_v24 = vmul.f32 %v219_v10, %v219_v10 }
  0x28   : > { %1249 = vmatprep.subr.bf16.mxu1 %v1414_v0  ;;  %496 = vadd.xlane.f32.xlu0 %v495_v40  ;;  %v522_v18 = vsel %vm225_vm1, %v480_v9, 0.0  ;;  %v525_v23 = vsel %vm225_vm1, %v481_v15, 0.0  ;;  %v542_v25 = vmul.f32 %v220_v11, %v220_v11  ;;  %v1229_v32 = vpack.c.bf16 %v222_v30, %v221_v28 }
  0x29   : > { %499 = vadd.xlane.f32.xlu1 %v498_v44  ;;  %v528_v26 = vsel %vm225_vm1, %v482_v22, 0.0  ;;  %v543_v33 = vmul.f32 %v221_v28, %v221_v28  ;;  %v544_v34 = vmul.f32 %v222_v30, %v222_v30  ;;  %v1235_v40 = vpack.c.bf16 %v224_v36, %v223_v35 }
  0x2a   : > { %v1262_v31 = vpack.c.bf16 %v542_v25, %v541_v24  ;;  %v545_v41 = vmul.f32 %v223_v35, %v223_v35  ;;  %v1417_v44 = vmov 1.0  }
  0x2b   : > { %v1266_v37 = vpack.c.bf16 %v544_v34, %v543_v33 }
  0x2c   : > { %502 = vadd.xlane.f32.xlu0 %v501_v48 }
  0x2d   : > { %505 = vadd.xlane.f32.xlu1 %v504_v52 }
  0x2e   : > { %1210 = vmatpush3.bf16.xpose.msk.msra.mxu0 %vm1501_vm2, %v1205_v17  ;;  %v1223_v17 = vpack.c.bf16 %v220_v11, %v219_v10 }
  0x2f   : > { %1252 = vmatpush3.bf16.xpose.msk.msra.mxu1 %vm1501_vm2, %v1250_v42  ;;  %1213 = vmatprep.subr.msk.bf16.mxu0 %vm1501_vm2, %v1211_v43  ;;  %v546_v42 = vmul.f32 %v224_v36, %v224_v36 }
  0x30   : > { %1253 = vmatprep.subr.bf16.mxu1 %v1414_v0  ;;  %508 = vadd.xlane.f32.xlu0 %v507_v58 }
  0x31   : > { %511 = vadd.xlane.f32.xlu1 %v510_v62 }
  0x34   : > { %514 = vadd.xlane.f32.xlu0 %v513_v4 }
  0x35   : > { %517 = vadd.xlane.f32.xlu1 %v516_v8 }
  0x36   : > { %1216 = vmatpush3.bf16.xpose.msk.msra.mxu0 %vm1501_vm2, %v1211_v43  ;;  %v1270_v43 = vpack.c.bf16 %v546_v42, %v545_v41 }
  0x37   : > { %1256 = vmatpush3.bf16.xpose.msk.msra.mxu1 %vm1501_vm2, %v1254_v60  ;;  %1219 = vmatprep.subr.msk.bf16.mxu0 %vm1501_vm2, %v1217_v61 }
  0x38   : > { %1257 = vmatprep.subr.bf16.mxu1 %v1414_v0  ;;  %520 = vadd.xlane.f32.xlu0 %v519_v14 }
  0x39   : > { %523 = vadd.xlane.f32.xlu1 %v522_v18 }
  0x3c   : > { %526 = vadd.xlane.f32.xlu0 %v525_v23 }
  0x3d   : > { %529 = vadd.xlane.f32.xlu1 %v528_v26 }
  0x3e   : > { %1222 = vmatpush3.bf16.xpose.msk.msra.mxu0 %vm1501_vm2, %v1217_v61 }
  0x3f   : > { %1260 = vmatpush3.bf16.xpose.msk.msra.mxu1 %vm1501_vm2, %v1258_v16  ;;  %1225 = vmatprep.subr.msk.bf16.mxu0 %vm1501_vm2, %v1223_v17 }
  0x40   : > { %1261 = vmatprep.subr.bf16.mxu1 %v1414_v0 }
  0x46   : > { %1228 = vmatpush3.bf16.xpose.msk.msra.mxu0 %vm1501_vm2, %v1223_v17 }
  0x47   : > { %1264 = vmatpush3.bf16.xpose.msk.msra.mxu1 %vm1501_vm2, %v1262_v31  ;;  %1231 = vmatprep.subr.msk.bf16.mxu0 %vm1501_vm2, %v1229_v32 }
  0x48   : > { %1265 = vmatprep.subr.bf16.mxu1 %v1414_v0 }
  0x4e   : > { %1234 = vmatpush3.bf16.xpose.msk.msra.mxu0 %vm1501_vm2, %v1229_v32 }
  0x4f   : > { %1268 = vmatpush3.bf16.xpose.msk.msra.mxu1 %vm1501_vm2, %v1266_v37  ;;  %1237 = vmatprep.subr.msk.bf16.mxu0 %vm1501_vm2, %v1235_v40 }
  0x50   : > { %1269 = vmatprep.subr.bf16.mxu1 %v1414_v0 }
  0x56   : > { %1240 = vmatpush3.bf16.xpose.msk.msra.mxu0 %vm1501_vm2, %v1235_v40 }
  0x57   : > { %1272 = vmatpush3.bf16.xpose.msk.msra.mxu1 %vm1501_vm2, %v1270_v43 }
  0x5d   : > { %1135 = vmatmul.mubr.msk.f32.vlgmr.msra.gmra.mrb[0].mxu0 %vm225_vm1, %v1528_v19  ;;  %v700_v19 = vlaneseq }
  0x5e   : > { %1191 = vmatmul.mubr.msk.f32.vlgmr.msra.gmra.mrb[0].mxu1 %vm225_vm1, %v1417_v44  ;;  %1137 = vmatprep.mubr.msk.f32.mxu0 %vm225_vm1, %v1531_v20 }
  0x61   : > { %1138 = vmatmul.mubr.msk.f32.gmra.mrb[2].mxu0 %vm225_vm1, %v1534_v21  ;;  %v701_v21 = vshrl.u32 %v700_v19, 7 }
  0x62   : > { %1140 = vmatprep.mubr.msk.f32.mxu0 %vm225_vm1, %v1544_v27 }
  0x65   : > { %1141 = vmatmul.mubr.msk.f32.gmra.mrb[4].mxu0 %vm225_vm1, %v1550_v29  ;;  %v702_v29 = vsub.s32 0, %v701_v21 }
  0x66   : > { %1143 = vmatprep.mubr.msk.f32.mxu0 %vm225_vm1, %v1566_v38 }
  0x69   : > { %1144 = vmatmul.mubr.msk.f32.gmra.mrb[6].mxu0 %vm225_vm1, %v1569_v39 }
  0x6a   : > { %1146 = vmatprep.mubr.msk.f32.mxu0 %vm225_vm1, %v1578_v46 }
  0x6d   : > { %1147 = vmatmul.mubr.msk.f32.gmra.mrb[8].mxu0 %vm225_vm1, %v1583_v47 }
  0x6e   : > { %1149 = vmatprep.mubr.msk.f32.mxu0 %vm225_vm1, %v1599_v56 }
  0x71   : > { %1150 = vmatmul.mubr.msk.f32.gmra.mrb[10].mxu0 %vm225_vm1, %v1602_v57 }
  0x72   : > { %1152 = vmatprep.mubr.msk.f32.mxu0 %vm225_vm1, %v1611_v1 }
  0x75   : > { %1153 = vmatmul.mubr.msk.f32.gmra.mrb[12].mxu0 %vm225_vm1, %v1616_v3 }
  0x76   : > { %1155 = vmatprep.mubr.msk.f32.mxu0 %vm225_vm1, %v207_v12 }
  0x79   : > { %1156 = vmatmul.mubr.msk.f32.gmra.mrb[14].mxu0 %vm225_vm1, %v208_v13 }
  0xad   : > { %v485_v2 = vpop.xlane.xlu0 %484 }
  0xae   : > { %v491_v0 = vpop.xlane.xlu1 %490 }
  0xb1   : > { %v488_v27 = vpop.xlane.xlu0 %487 }
  0xb2   : > { %v494_v20 = vpop.xlane.xlu1 %493 }
  0xb5   : > { %v497_v39 = vpop.xlane.xlu0 %496 }
  0xb6   : > { %v500_v38 = vpop.xlane.xlu1 %499 }
  0xb9   : > { %v503_v59 = vpop.xlane.xlu0 %502 }
  0xba   : > { %v506_v55 = vpop.xlane.xlu1 %505 }
  0xbd   : > { %v509_v11 = vpop.xlane.xlu0 %508 }
  0xbe   : > { %v512_v9 = vpop.xlane.xlu1 %511 }
  0xc1   : > { %v515_v33 = vpop.xlane.xlu0 %514 }
  0xc2   : > { %v518_v28 = vpop.xlane.xlu1 %517 }
  0xc5   : > { %v521_v21 = vpop.xlane.xlu0 %520 }
  0xc6   : > { %v524_v19 = vpop.xlane.xlu1 %523 }
 0x130   : > { %v1136_v45 = vpop.f32.mrb[0].mxu0 }
 0x131   : > { %v669_v46 = vmul.f32 2.0, %v1136_v45  ;;  %v388_v47 = vpop.f32.mrb[1].mxu0  ;;  %v664_v48 = vpop.f32.mrb[0].mxu1 }
 0x132   : > { %v668_v49 = vmul.f32 2.0, %v388_v47  ;;  %v1696_v50 = vrot.slane %v664_v48, %v702_v29  ;;  %v1192_v51 = vpop.f32.mrb[1].mxu1 }
 0x133   : > { %v685_v52 = vsub.f32 %v669_v46, %v488_v27 }
 0x134   : > { %v684_v53 = vsub.f32 %v668_v49, %v485_v2  ;;  %v1139_v54 = vpop.f32.mrb[2].mxu0 }
 0x135   : > { %v705_v56 = vsub.f32 %v685_v52, %v1696_v50  ;;  %v671_v57 = vmul.f32 2.0, %v1139_v54  ;;  %v398_v58 = vpop.f32.mrb[3].mxu0  ;;  %v530_v54 = vpop.xlane.xlu1 %529 }
 0x136   : > { %v704_v60 = vsub.f32 %v684_v53, %v1696_v50  ;;  %v670_v61 = vmul.f32 2.0, %v398_v58  ;;  %v527_v58 = vpop.xlane.xlu0 %526 }
 0x137   : > { %v687_v62 = vsub.f32 %v671_v57, %v494_v20 }
 0x138   : > { %v1009_v63 = vpack.c.bf16 %v705_v56, %v704_v60  ;;  %v686_v1 = vsub.f32 %v670_v61, %v491_v0  ;;  %v1142_v3 = vpop.f32.mrb[4].mxu0 }
 0x139   : > { %v707_v4 = vsub.f32 %v687_v62, %v1696_v50  ;;  %v673_v5 = vmul.f32 2.0, %v1142_v3  ;;  %v408_v6 = vpop.f32.mrb[5].mxu0 }
 0x13a   : > { %1010 = vst [vmem:[%s1703_s5] sm:$0xff] %v1009_v63   ;;  %v706_v7 = vsub.f32 %v686_v1, %v1696_v50  ;;  %v672_v8 = vmul.f32 2.0, %v408_v6 }
 0x13b   : > { %v689_v10 = vsub.f32 %v673_v5, %v500_v38 }
 0x13c   : > { %v1014_v12 = vpack.c.bf16 %v707_v4, %v706_v7  ;;  %v688_v13 = vsub.f32 %v672_v8, %v497_v39  ;;  %v1145_v14 = vpop.f32.mrb[6].mxu0 }
 0x13d   : > { %v709_v15 = vsub.f32 %v689_v10, %v1696_v50  ;;  %v675_v16 = vmul.f32 2.0, %v1145_v14  ;;  %v418_v17 = vpop.f32.mrb[7].mxu0 }
 0x13e   : > { %1046 = vst [vmem:[%s1703_s5 + $0x8] sm:$0xff] %v1014_v12   ;;  %v708_v18 = vsub.f32 %v688_v13, %v1696_v50  ;;  %v674_v22 = vmul.f32 2.0, %v418_v17 }
 0x13f   : > { %v691_v23 = vsub.f32 %v675_v16, %v506_v55 }
 0x140   : > { %v1019_v24 = vpack.c.bf16 %v709_v15, %v708_v18  ;;  %v690_v25 = vsub.f32 %v674_v22, %v503_v59  ;;  %v1148_v26 = vpop.f32.mrb[8].mxu0 }
 0x141   : > { %v711_v30 = vsub.f32 %v691_v23, %v1696_v50  ;;  %v677_v31 = vmul.f32 2.0, %v1148_v26  ;;  %v428_v32 = vpop.f32.mrb[9].mxu0 }
 0x142   : > { %1047 = vst [vmem:[%s1703_s5 + $0x10] sm:$0xff] %v1019_v24   ;;  %v710_v34 = vsub.f32 %v690_v25, %v1696_v50  ;;  %v676_v35 = vmul.f32 2.0, %v428_v32 }
 0x143   : > { %v693_v36 = vsub.f32 %v677_v31, %v512_v9 }
 0x144   : > { %v1024_v37 = vpack.c.bf16 %v711_v30, %v710_v34  ;;  %v692_v40 = vsub.f32 %v676_v35, %v509_v11  ;;  %v1151_v41 = vpop.f32.mrb[10].mxu0 }
 0x145   : > { %v713_v42 = vsub.f32 %v693_v36, %v1696_v50  ;;  %v679_v43 = vmul.f32 2.0, %v1151_v41  ;;  %v438_v44 = vpop.f32.mrb[11].mxu0 }
 0x146   : > { %1048 = vst [vmem:[%s1703_s5 + $0x18] sm:$0xff] %v1024_v37   ;;  %v712_v0 = vsub.f32 %v692_v40, %v1696_v50  ;;  %v678_v2 = vmul.f32 2.0, %v438_v44 }
 0x147   : > { %v695_v20 = vsub.f32 %v679_v43, %v518_v28 }
 0x148   : > { %v1029_v27 = vpack.c.bf16 %v713_v42, %v712_v0  ;;  %v694_v29 = vsub.f32 %v678_v2, %v515_v33  ;;  %v1154_v38 = vpop.f32.mrb[12].mxu0 }
 0x149   : > { %v715_v39 = vsub.f32 %v695_v20, %v1696_v50  ;;  %v681_v45 = vmul.f32 2.0, %v1154_v38  ;;  %v448_v46 = vpop.f32.mrb[13].mxu0 }
 0x14a   : > { %1049 = vst [vmem:[%s1703_s5 + $0x20] sm:$0xff] %v1029_v27   ;;  %v714_v47 = vsub.f32 %v694_v29, %v1696_v50  ;;  %v680_v48 = vmul.f32 2.0, %v448_v46 }
 0x14b   : > { %v697_v49 = vsub.f32 %v681_v45, %v524_v19 }
 0x14c   : > { %v1034_v51 = vpack.c.bf16 %v715_v39, %v714_v47  ;;  %v696_v52 = vsub.f32 %v680_v48, %v521_v21  ;;  %v1157_v53 = vpop.f32.mrb[14].mxu0 }
 0x14d   : > { %v717_v55 = vsub.f32 %v697_v49, %v1696_v50  ;;  %v683_v56 = vmul.f32 2.0, %v1157_v53  ;;  %v458_v57 = vpop.f32.mrb[15].mxu0 }
 0x14e   : > { %1050 = vst [vmem:[%s1703_s5 + $0x28] sm:$0xff] %v1034_v51   ;;  %v716_v59 = vsub.f32 %v696_v52, %v1696_v50  ;;  %v682_v60 = vmul.f32 2.0, %v458_v57 }
 0x14f   : > { %v699_v61 = vsub.f32 %v683_v56, %v530_v54 }
 0x150   : > { %v1039_v62 = vpack.c.bf16 %v717_v55, %v716_v59  ;;  %v698_v63 = vsub.f32 %v682_v60, %v527_v58 }
 0x151   : > { %v719_v1 = vsub.f32 %v699_v61, %v1696_v50 }
 0x152   : > { %1051 = vst [vmem:[%s1703_s5 + $0x30] sm:$0xff] %v1039_v62   ;;  %v718_v3 = vsub.f32 %v698_v63, %v1696_v50 }
 0x154   : > { %v1044_v4 = vpack.c.bf16 %v719_v1, %v718_v3 }
 0x156   : > { %1052 = vst [vmem:[%s1703_s5 + $0x38] sm:$0xff] %v1044_v4  }
 0x157   : > { %1347 = shalt.err (!%p1344_p5)
}
 0x158   : > { %s1348_s25 = scalar_lea.hbm %s1730_s16, 1024  ;;  %s1352_s28 = scalar_lea.hbm %s1785_s2, 2048 }
 0x159   : > { %p1349_p6 = scmp.ne.s32.totalorder %s1730_s16, %s1348_s25  ;;  %p1353_p10 = scmp.lt.u32.totalorder %s1730_s16, %s1785_s2 }
 0x15a   : > { %p1354_p11 = scmp.lt.u32.totalorder %s1352_s28, %s1348_s25  ;;  %p1356_p13 = scmp.lt.u32.totalorder %s1348_s25, %s1730_s16 }
 0x15b   : > { %p1350_p7 = pnand %p1349_p6, %p1476_p4 }
 0x15c   : > { %p1355_p12 = por %p1354_p11, %p1353_p10 }
 0x15d   : > { %p1351_p9 = pneg %p1350_p7 }
 0x15e   : > { %p1357_p0 = por %p1356_p13, %p1355_p12 }
 0x160   : > { %p1358_p1 = pnand %p1357_p0, %p1351_p9 }
 0x162   : > { %1361 = shalt.err (!%p1358_p1)
}
 0x163   : > { %s1419_s3 = smov 64   ;;  %s1420_s4 = smov 4  }
 0x164   : > { %1273 = dma.vmem_to_hbm [thread:$0]  (%p1476_p4), %s1732_s7, 1024, %s1730_s16, %s1737_s12, %s1419_s3, %s1419_s3, %s1420_s4  }
 0x165 PF: > { %p1279_p2 = scmp.ge.s32.totalorder %s1412_s14, 2  ;;  %s831_s5 = sand.u32 1, %s1392_s9  }
 0x166   : > { %s832_s6 = scalar_lea.sflag [#allocation3], %s831_s5 }
 0x167   : > { %p1276_p3 = pnand %p1279_p2, %p1483_p8 }
 0x169   : > { %1387 = dma.done.wait (!%p1276_p3), %s832_s6, 1024  }
 0x16a   : > { %1389 = vsyncadd (!%p1276_p3), %s832_s6, 4294966272  ;;  %s15_s14 = sadd.s32 1, %s1412_s14   ;;  %s1790_s9 = smov %s1396_s10 }
 0x16b   : > { %p12_p5 = scmp.ge.s32.totalorder %s15_s14, 4   ;;  %s1791_s10 = smov %s1400_s11 }
 0x16c   : > { %s1792_s11 = smov %s1489_s22  ;;  %s1793_s12 = smov %s1408_s13 }
 0x16d   : > { %s1794_s13 = smov %s1796_s17  ;;  %14 = sbr.rel (!%p12_p5) target bundleno = 4 (0x4), region = 66 }
 0x174   :  { %837 = vsyncpa [#allocation3], 1 }
 0x175   :  { %839 = vsyncpa [#allocation3 + $0x1], 1 }

</bundles_post_ra>
